<compile_context>
chip_gen: v7x
topology: tpu7x:2x2x1
jax: 0.10.0
libtpu: 0.0.40
codegen_flags: <defaults>
</compile_context>

<pallas_src>
import math

import jax
import jax.numpy as jnp
from jax.experimental import pallas as pl
from jax.experimental.pallas import tpu as pltpu


def generate_positional_encoding(d_model: int, grid_size: int) -> jnp.ndarray:
    """Deterministic parameter init, matching the PyTorch __init__ exactly.

    PyTorch broadcast semantics: pos_enc[:, :, 0::2] = sin(position * div_term)
    assigns a (G, D/2) tensor into a (G, G, D/2) slice, so the encoding varies
    along the *second* spatial axis and is constant along the first.
    """
    assert d_model % 2 == 0, "interleaved sin/cos init assumes even d_model"
    position = jnp.arange(0, grid_size, dtype=jnp.float32)[:, None]          # (G, 1)
    div_term = jnp.exp(
        jnp.arange(0, d_model, 2, dtype=jnp.float32)
        * (-(math.log(10000.0) / d_model))
    )                                                                          # (D/2,)
    angles = position * div_term                                               # (G, D/2)
    sin = jnp.sin(angles)
    cos = jnp.cos(angles)
    # Interleave: even channels <- sin, odd channels <- cos.
    interleaved = jnp.stack([sin, cos], axis=-1).reshape(grid_size, d_model)   # (G, D)
    # Broadcast along the first spatial axis (PyTorch broadcast semantics).
    pos_enc = jnp.broadcast_to(
        interleaved[None, :, :], (grid_size, grid_size, d_model)
    )
    return pos_enc[None, ...]                                                  # (1, G, G, D)


def _repeat_kernel(emb_ref, out_ref):
    # emb_ref: (S, L)      resident, sublane+lane-dense embedding slab
    # out_ref: (bt, S, L)  output block for bt batch rows
    # Broadcasting only along the leading (non-sublane/lane) dim -> pure
    # full-vreg copies, unmasked vst on every generation.
    out_ref[...] = jnp.broadcast_to(emb_ref[...][None, :, :], out_ref.shape)


def _choose_layout(flat: int):
    """Pick (S, L): L a multiple of 128, prefer S a multiple of 8 (full sublanes)."""
    fallback = None
    for lane in (4096, 2048, 1024, 512, 256, 128):
        if flat % lane == 0:
            sub = flat // lane
            if sub % 8 == 0:
                return sub, lane
            if fallback is None:
                fallback = (sub, lane)
    return fallback  # may be None if flat is not a multiple of 128


def absolute_positional_encoding_forward(
    embedding: jnp.ndarray,
    b: int,
    *,
    min_pallas_bytes: int = 256 * 1024,
    max_bt: int = 128,
) -> jnp.ndarray:
    """Pallas implementation of forward(b): embedding.repeat(b, 1, 1, 1)."""
    _, g1, g2, d = embedding.shape
    flat = g1 * g2 * d
    itemsize = jnp.dtype(embedding.dtype).itemsize
    out_bytes = b * flat * itemsize

    layout = _choose_layout(flat)

    # Fast path: tiny output (launch overhead >> copy cost) or no lane-dense
    # layout available -> let XLA broadcast / fuse into the consumer.
    if out_bytes <= min_pallas_bytes or layout is None:
        return jnp.broadcast_to(embedding, (b, g1, g2, d))

    sub, lane = layout                               # per-batch slab: (sub, lane)
    emb_2d = embedding.reshape(sub, lane)            # free view, data contiguous

    # Batch-tile sizing: near-equal blocks of at most max_bt rows (~4 MiB at
    # default), and at least 2 grid steps whenever b >= 2 so both v7x
    # TensorCores participate (harmless on single-TC v5e/v6e).
    n_steps = max(2, pl.cdiv(b, max_bt)) if b >= 2 else 1
    bt = pl.cdiv(b, n_steps)
    grid_len = pl.cdiv(b, bt)

    out_3d = pl.pallas_call(
        _repeat_kernel,
        out_shape=jax.ShapeDtypeStruct((b, sub, lane), embedding.dtype),
        grid_spec=pltpu.PrefetchScalarGridSpec(
            num_scalar_prefetch=0,
            grid=(grid_len,),
            in_specs=[
                # Invariant block: same (sub, lane) slab every grid step.
                pl.BlockSpec((sub, lane), lambda i: (0, 0)),
            ],
            out_specs=pl.BlockSpec((bt, sub, lane), lambda i: (i, 0, 0)),
        ),
        compiler_params=pltpu.CompilerParams(
            # Batch-block axis is independent -> shard across TCs (v7x megacore).
            dimension_semantics=("parallel",),
        ),
        # Pure-bandwidth op: read the slab once, write the full output.
        cost_estimate=pl.CostEstimate(
            flops=0,
            transcendentals=0,
            bytes_accessed=flat * itemsize + out_bytes,
        ),
    )(emb_2d)

    return out_3d.reshape(b, g1, g2, d)              # free reshape back


if __name__ == "__main__":
    d_model = 32
    grid_size = 16

    # Deterministic parameter init (no checkpoint load). PRNGKey kept for
    # reproducibility conventions even though the encoding itself is analytic.
    _ = jax.random.PRNGKey(0)
    embedding = generate_positional_encoding(d_model, grid_size)      # (1, 16, 16, 32)

    # (a) Tiny batch (module's typical b=2): fast path, XLA broadcast.
    b_small = 2
    ref_small = jnp.broadcast_to(embedding, (b_small, grid_size, grid_size, d_model))
    out_small = jax.block_until_ready(
        absolute_positional_encoding_forward(embedding, b_small)
    )
    assert out_small.shape == (b_small, grid_size, grid_size, d_model)
    assert out_small.dtype == jnp.float32
    assert bool(jnp.allclose(out_small, ref_small))

    # (b) Same tiny batch forced through the Pallas kernel path (correctness
    #     of the kernel even when bt=1 / small b).
    out_small_k = jax.block_until_ready(
        absolute_positional_encoding_forward(embedding, b_small, min_pallas_bytes=0)
    )
    assert bool(jnp.allclose(out_small_k, ref_small))

    # (c) Larger batch: Pallas path by default (>= 2 batch-blocked grid steps).
    b_big = 64
    ref_big = jnp.broadcast_to(embedding, (b_big, grid_size, grid_size, d_model))
    out_big = jax.block_until_ready(
        absolute_positional_encoding_forward(embedding, b_big)
    )
    assert out_big.shape == (b_big, grid_size, grid_size, d_model)
    assert bool(jnp.allclose(out_big, ref_big))

    print("KERNEL_OK")
</pallas_src>

<mosaic_0001>
module attributes {stable_mosaic.version = 11 : i64} {
  func.func @_repeat_kernel(%arg0: i32, %arg1: memref<8x1024xf32, #tpu.memory_space<vmem>>, %arg2: memref<1x8x1024xf32, #tpu.memory_space<vmem>>) attributes {dimension_semantics = [#tpu.dimension_semantics<parallel>], iteration_bounds = array<i64: 2>, scalar_prefetch = 0 : i64, scratch_operands = 0 : i64, tpu.core_type = #tpu.core_type<tc>, window_params = [{pipeline_mode = #tpu.pipeline_mode<synchronous>, transform_indices = @transform_0, window_bounds = array<i64: 8, 1024>}, {transform_indices = @transform_1, window_bounds = array<i64: 1, 8, 1024>}]} {
    %c0 = arith.constant 0 : index
    %c0_0 = arith.constant 0 : index
    %0 = vector.load %arg1[%c0, %c0_0] : memref<8x1024xf32, #tpu.memory_space<vmem>>, vector<8x1024xf32>
    %1 = vector.shape_cast %0 : vector<8x1024xf32> to vector<1x8x1024xf32>
    %c0_1 = arith.constant 0 : index
    %c0_2 = arith.constant 0 : index
    %c0_3 = arith.constant 0 : index
    %2 = vector.load %arg2[%c0_1, %c0_2, %c0_3] : memref<1x8x1024xf32, #tpu.memory_space<vmem>>, vector<1x8x1024xf32>
    tpu.vector_store %arg2[%c0_1, %c0_2, %c0_3], %1 {strides = array<i32>} : memref<1x8x1024xf32, #tpu.memory_space<vmem>>, vector<1x8x1024xf32>,
    return
  }
  func.func @transform_0(%arg0: i32) -> (i32, i32) {
    %c0_i32 = arith.constant 0 : i32
    %c0_i32_0 = arith.constant 0 : i32
    %c0_i32_1 = arith.constant 0 : i32
    return %c0_i32, %c0_i32_0 : i32, i32
  }
  func.func @transform_1(%arg0: i32) -> (i32, i32, i32) {
    %c0_i32 = arith.constant 0 : i32
    %c0_i32_0 = arith.constant 0 : i32
    %c0_i32_1 = arith.constant 0 : i32
    return %arg0, %c0_i32, %c0_i32_0 : i32, i32, i32
  }
}

</mosaic_0001>

<bundles_post_ra>
// kernel: tpu_custom_call.1
= control target key start
LH: loop header
LB: loop body
LE: loop exit
PB: predicated region body
PF: predicated region fallthrough
CT: control target
= control target key end

     0   :  { %6 = vsyncpa [#allocation3], 0  ;;  %s498_s0 = inlined_call_operand.hbm [shape: f32[8,1024], index: 0, kind: input, shape index: {}]   ;;  %s499_s1 = inlined_call_operand.hbm [shape: f32[2,8,1024], index: 1, kind: output, shape index: {}]  }
   0x1   :  { %7 = vsyncpa [#allocation4], 0 }
   0x2   :  { %9 = vsyncpa [#allocation4 + $0x1], 0  ;;  %s368_s6 = smov 0   ;;  %s370_s7 = smov 0  }
   0x3   :  { %s372_s8 = smov 0   ;;  %s374_s9 = smov 0  }
   0x4 LB: > { %s389_s10 = sadd.s32 4294967295, %s354_s9   ;;  %s198_s11 = sadd.s32 4294967294, %s354_s9   ;;  %s354_s9 = sphi %s374_s9, %s515_s9   ;;  %s350_s8 = sphi %s372_s8, %s514_s8   ;;  %s346_s7 = sphi %s370_s7, %s513_s7   ;;  %s342_s6 = sphi %s368_s6, %s512_s6  }
   0x5   : > { %s393_s12 = sadd.s32 1, %s354_s9   ;;  %s43_s13 = sadd.s32 1, %s350_s8 }
   0x6   : > { %s40_s14 = ssub.s32 %s354_s9, %s393_s12  ;;  %p53_p0 = scmp.ne.s32.totalorder %s350_s8, %s346_s7 }
   0x7   : > { %p41_p1 = scmp.eq.s32.totalorder %s40_s14, 0  ;;  %p54_p2 = scmp.eq.s32.totalorder %s389_s10, 1 }
   0x8   : > { %p59_p3 = scmp.ne.s32.totalorder %s346_s7, %s342_s6  ;;  %p60_p4 = scmp.eq.s32.totalorder %s198_s11, 1 }
   0x9   : > { %s404_s15 = scalar_select %p41_p1, %s350_s8, %s43_s13  }
   0xa   : > { %p406_p5 = por %p54_p2, %p53_p0  ;;  %p410_p6 = por %p60_p4, %p59_p3 }
   0xb   : > { %p199_p7 = scmp.ge.s32.totalorder %s354_s9, 1  ;;  %p67_p8 = scmp.lt.s32.totalorder %s354_s9, 3 }
   0xc   : > { %s503_s16 = scalar_select %p406_p5, 1, 0 }
   0xd   : > { %s504_s17 = scalar_select %p410_p6, 1, 0 }
   0xe   : > { %p500_p9 = scmp.eq.s32.totalorder %s389_s10, 0  ;;  %p417_p10 = pnand %p199_p7, %p67_p8 }
   0xf   : > { %s356_s19 = smov [#allocation2]   ;;  %s260_s24 = scalar_lea.hbm %s498_s0, 1024 }
  0x10   : > { %s505_s18 = scalar_select %p417_p10, 1, 0 }
  0x11   : > { %s80_s20 = sshll.u32 %s356_s19, 4  ;;  %p216_p11 = pneg %p417_p10  ;;  %s81_s20 = int_to_ptr.vmem [resolvable:$true] %s80_s20 }
  0x12   : > { %p261_p13 = scmp.ne.s32.totalorder %s498_s0, %s260_s24  ;;  %p267_p3 = scmp.lt.u32.totalorder %s260_s24, %s498_s0 }
  0x13   : > { %p425_p12 = pnand %p500_p9, %p216_p11 }
  0x15   : > { %p262_p0 = pneg %p425_p12 }
  0x17   : > { %p263_p1 = pnand %p262_p0, %p261_p13 }
  0x19   : > { %p264_p2 = pneg %p263_p1 }
  0x1b   : > { %p269_p4 = pnand %p267_p3, %p264_p2 }
  0x1d   : > { %272 = shalt.err (!%p269_p4)
}
  0x1e   : > { %s273_s29 = scalar_lea.vmem %s81_s20, 1024  ;;  %p281_p9 = scmp.lt.s32.totalorder %s81_s20, %s81_s20 }
  0x1f   : > { %p274_p7 = scmp.ne.s32.totalorder %s81_s20, %s273_s29  ;;  %p282_p6 = scmp.lt.s32.totalorder %s273_s29, %s273_s29 }
  0x21   : > { %p276_p8 = pnand %p274_p7, %p262_p0  ;;  %p283_p5 = por %p282_p6, %p281_p9 }
  0x23   : > { %p277_p11 = pneg %p276_p8 }
  0x25   : > { %p284_p10 = pnand %p283_p5, %p277_p11 }
  0x27   : > { %287 = shalt.err (!%p284_p10)
}
  0x28   : > { %219 = dma.hbm_to_vmem [thread:$0]  (!%p425_p12), %s498_s0, 1024, %s81_s20, [#allocation3]  }
  0x29   : > { %p507_p13 = scmp.ne.s32.totalorder %s505_s18, 0 }
  0x2a   : > { %p508_p1 = scmp.eq.s32.totalorder (!%p507_p13), %s389_s10, 0 }
  0x2b   : > { %93 = sbr.rel (%p507_p13) target bundleno = 77 (0x4d), region = 24 }
  0x32   : > { %333 = dma.done.wait (%p508_p1), [#allocation3], 1024   ;;  %p509_p0 = pmov %p508_p1 }
  0x33   : > { %s105_s3 = sand.u32 1, %s346_s7   ;;  %s209_s5 = sshll.u32 %s389_s10, 10  ;;  %v108_v0 = vld [vmem:[#allocation2] sm:$0xff]  ;;  %v109_v1 = vld [vmem:[#allocation2 + $0x8] sm:$0xff]  ;;  %v110_v2 = vld [vmem:[#allocation2 + $0x10] sm:$0xff] }
  0x34   : > { %335 = vsyncadd (%p509_p0), [#allocation3], 4294966272  ;;  %s203_s4 = sshll.u32 %s105_s3, 6  ;;  %v111_v3 = vld [vmem:[#allocation2 + $0x18] sm:$0xff]  ;;  %v112_v4 = vld [vmem:[#allocation2 + $0x20] sm:$0xff]  ;;  %s456_s19 = scalar_lea.hbm %s499_s1, %s209_s5 }
  0x35   : > { %s107_s11 = scalar_lea.vmem [#allocation5], %s203_s4  ;;  %v113_v5 = vld [vmem:[#allocation2 + $0x28] sm:$0xff]  ;;  %v114_v6 = vld [vmem:[#allocation2 + $0x30] sm:$0xff]  ;;  %v115_v7 = vld [vmem:[#allocation2 + $0x38] sm:$0xff]  ;;  %s125_s10 = scalar_lea.sflag [#allocation4], %s105_s3 }
  0x36   : > { %s139_s13 = sshll.u32 %s107_s11, 4  ;;  %116 = vst [vmem:[%s107_s11] sm:$0xff] %v108_v0  ;;  %117 = vst [vmem:[%s107_s11 + $0x8] sm:$0xff] %v109_v1  ;;  %p510_p6 = scmp.ne.s32.totalorder %s503_s16, 0  ;;  %s458_s13 = int_to_ptr.vmem [resolvable:$true] %s139_s13 }
  0x37   : > { %118 = vst [vmem:[%s107_s11 + $0x10] sm:$0xff] %v110_v2  ;;  %119 = vst [vmem:[%s107_s11 + $0x18] sm:$0xff] %v111_v3  ;;  %s288_s20 = scalar_lea.vmem %s458_s13, 1024  ;;  %s357_s21 = smov [#allocation5]  }
  0x38   : > { %120 = vst [vmem:[%s107_s11 + $0x20] sm:$0xff] %v112_v4  ;;  %121 = vst [vmem:[%s107_s11 + $0x28] sm:$0xff] %v113_v5  ;;  %p289_p5 = scmp.ne.s32.totalorder %s458_s13, %s288_s20  ;;  %s292_s22 = sshll.u32 %s357_s21, 4  ;;  %s293_s22 = int_to_ptr.vmem [resolvable:$false] %s292_s22 }
  0x39   : > { %122 = vst [vmem:[%s107_s11 + $0x30] sm:$0xff] %v114_v6  ;;  %123 = vst [vmem:[%s107_s11 + $0x38] sm:$0xff] %v115_v7  ;;  %s294_s23 = scalar_lea.vmem %s293_s22, 2048  ;;  %p295_p12 = scmp.lt.s32.totalorder %s458_s13, %s293_s22 }
  0x3a   : > { %p290_p9 = pnand %p289_p5, %p510_p6  ;;  %p296_p2 = scmp.lt.s32.totalorder %s294_s23, %s288_s20 }
  0x3c   : > { %p291_p10 = pneg %p290_p9  ;;  %p297_p3 = por %p296_p2, %p295_p12 }
  0x3e   : > { %p298_p4 = pnand %p297_p3, %p291_p10 }
  0x40   : > { %301 = shalt.err (!%p298_p4)
}
  0x41   : > { %s302_s24 = scalar_lea.hbm %s456_s19, 1024  ;;  %s306_s27 = scalar_lea.hbm %s499_s1, 2048 }
  0x42   : > { %p303_p7 = scmp.ne.s32.totalorder %s456_s19, %s302_s24  ;;  %p307_p13 = scmp.lt.u32.totalorder %s456_s19, %s499_s1 }
  0x43   : > { %p308_p1 = scmp.lt.u32.totalorder %s306_s27, %s302_s24  ;;  %p310_p5 = scmp.lt.u32.totalorder %s302_s24, %s456_s19 }
  0x44   : > { %p304_p8 = pnand %p303_p7, %p510_p6 }
  0x45   : > { %p309_p0 = por %p308_p1, %p307_p13 }
  0x46   : > { %p305_p11 = pneg %p304_p8 }
  0x47   : > { %p311_p9 = por %p310_p5, %p309_p0 }
  0x49   : > { %p312_p10 = pnand %p311_p9, %p305_p11 }
  0x4b   : > { %315 = shalt.err (!%p312_p10)
}
  0x4c   : > { %214 = dma.vmem_to_hbm [thread:$0]  (%p510_p6), %s458_s13, 1024, %s456_s19, %s125_s10  }
  0x4d PF: > { %p226_p12 = scmp.ge.s32.totalorder %s354_s9, 2  ;;  %s151_s30 = sand.u32 1, %s342_s6  }
  0x4e   : > { %p511_p2 = scmp.ne.s32.totalorder %s504_s17, 0  ;;  %s152_s2 = scalar_lea.sflag [#allocation4], %s151_s30 }
  0x50   : > { %p221_p3 = pnand %p226_p12, %p511_p2 }
  0x52   : > { %337 = dma.done.wait (!%p221_p3), %s152_s2, 1024  }
  0x53   : > { %339 = vsyncadd (!%p221_p3), %s152_s2, 4294966272  ;;  %p12_p4 = scmp.ge.s32.totalorder %s393_s12, 4   ;;  %s512_s6 = smov %s346_s7 }
  0x54   : > { %s513_s7 = smov %s350_s8  ;;  %s514_s8 = smov %s404_s15 }
  0x55   : > { %s515_s9 = smov %s393_s12  ;;  %14 = sbr.rel (!%p12_p4) target bundleno = 4 (0x4), region = 61 }
  0x5c   :  { %157 = vsyncpa [#allocation3], 1 }
  0x5d   :  { %159 = vsyncpa [#allocation3 + $0x1], 1 }
  0x5e   :  { %160 = vsyncpa [#allocation4], 1 }
  0x5f   :  { %162 = vsyncpa [#allocation4 + $0x1], 1 }

</bundles_post_ra>
